<compile_context>
chip_gen: v5e
topology: v5e:2x2
jax: 0.10.0
libtpu: 0.0.40
codegen_flags: <defaults>
</compile_context>

<pallas_src>
import jax
import jax.numpy as jnp
import numpy as np
from jax import lax
from jax.experimental import pallas as pl
from jax.experimental.pallas import tpu as pltpu


# ----------------------- prologue: node_embed-only work -------------------- #
def _agcrn_prologue_kernel(e_ref, gbp_ref, ubp_ref,
                           cheb_ref, gb_ref, ub_ref, ex_ref, es_ref):
    """Runs once (no grid): support softmax, Chebyshev stack (bf16), per-node
    biases, and the batch-invariant expanded-embedding Kronecker operands."""
    f32 = jnp.float32
    E = e_ref[...].astype(f32)                                     # [N, D]
    N, D = E.shape
    n_cheb = cheb_ref.shape[0]                                     # cheb_k - 1

    # supports = softmax(relu(E @ E^T), dim=1)   (runs once -> exact divide)
    A = lax.dot_general(E, E, (((1,), (1,)), ((), ())),
                        preferred_element_type=f32)                # [N, N]
    A = jnp.maximum(A, 0.0)
    A = A - jnp.max(A, axis=1, keepdims=True)
    expA = jnp.exp(A)
    S = expA / jnp.sum(expA, axis=1, keepdims=True)                # [N, N] f32

    # Chebyshev stack T_1 .. T_{K-1} (T_0 = I applied implicitly in the step
    # kernel).  Recurrence in f32, stored bf16 (MXU operand dtype).
    cheb_ref[0] = S.astype(cheb_ref.dtype)
    if n_cheb >= 2:
        row = lax.broadcasted_iota(jnp.int32, (N, N), 0)
        col = lax.broadcasted_iota(jnp.int32, (N, N), 1)
        t_prev2 = (row == col).astype(f32)                         # T_0 = I
        t_prev1 = S                                                # T_1 = S
        for k in range(1, n_cheb):
            t_k = (2.0 * jnp.dot(S, t_prev1, preferred_element_type=f32)
                   - t_prev2)
            cheb_ref[k] = t_k.astype(cheb_ref.dtype)
            t_prev2, t_prev1 = t_prev1, t_k

    # per-node biases (gate bias stays fused: z|r)
    gb_ref[...] = jnp.dot(E, gbp_ref[...], preferred_element_type=f32)
    ub_ref[...] = jnp.dot(E, ubp_ref[...], preferred_element_type=f32)

    # Expanded embedding:  E_exp[n, d*W + j] = E[n, d],  j in [0, W).
    # (Per-d lane broadcasts run exactly once here, not per grid step.)
    wx = ex_ref.shape[1] // D
    ws = es_ref.shape[1] // D
    ex_ref[...] = jnp.concatenate(
        [jnp.broadcast_to(E[:, d:d + 1], (N, wx)) for d in range(D)], axis=-1)
    es_ref[...] = jnp.concatenate(
        [jnp.broadcast_to(E[:, d:d + 1], (N, ws)) for d in range(D)], axis=-1)


# ----------------------- main: per-batch-block GRU step -------------------- #
def _agcrn_step_kernel(x_ref, s_ref, cheb_ref, ex_ref, es_ref,
                       wx_ref, wgs_ref, wus_ref, gb_ref, ub_ref, h_ref):
    f32 = jnp.float32
    bf16 = jnp.bfloat16
    TB, N, _ = x_ref.shape
    H = s_ref.shape[-1]
    n_cheb = cheb_ref.shape[0]                                     # cheb_k - 1
    rows = TB * N

    xb = x_ref[...].astype(f32)                                    # [TB, N, di]
    sb = s_ref[...].astype(f32)                                    # [TB, N, H]

    # Broadcast each Chebyshev support once per grid step (bf16 MXU operands).
    cheb_b = [jnp.broadcast_to(cheb_ref[k], (TB, N, N)) for k in range(n_cheb)]
    dn = (((2,), (1,)), ((0,), (0,)))      # [TB,N,N] x [TB,N,c] -> [TB,N,c]

    def graph_feats(v):
        # [v | T_1 v | ... | T_{K-1} v]   (identity support applied implicitly)
        v16 = v.astype(bf16)
        parts = [v]
        for k in range(n_cheb):
            parts.append(lax.dot_general(cheb_b[k], v16, dn,
                                         preferred_element_type=f32))
        return jnp.concatenate(parts, axis=-1)                     # [TB, N, K*c]

    def kron_lhs(g, e_exp):
        # L[b, n, d*Kc + j] = E[n, d] * g[b, n, j]
        # one lane-tile + one broadcast multiply + one bf16 cast (no per-d work)
        D = e_exp.shape[1] // g.shape[-1]
        g_rep = jnp.concatenate([g] * D, axis=-1)                  # [TB, N, D*Kc]
        return (e_exp[None] * g_rep).astype(bf16).reshape(rows, -1)

    # x-part: computed ONCE, shared by gate and candidate paths; gate & update
    # x-part weights are fused into one [D*K*di, 3H] operand -> one matmul.
    lx = kron_lhs(graph_feats(xb), ex_ref[...])                    # [rows, DKdi]
    px = jnp.dot(lx, wx_ref[...], preferred_element_type=f32)      # [rows, 3H]

    # gate path: fused z|r projection (ONE matmul, 2H lanes wide)
    ls = kron_lhs(graph_feats(sb), es_ref[...])                    # [rows, DKH]
    pg = px[:, :2 * H] + jnp.dot(ls, wgs_ref[...], preferred_element_type=f32)
    zr = jax.nn.sigmoid(pg.reshape(TB, N, 2 * H) + gb_ref[...][None])
    z = zr[..., :H]
    r = zr[..., H:]

    # candidate path (only the state part needs fresh support matmuls)
    lzs = kron_lhs(graph_feats(z * sb), es_ref[...])               # [rows, DKH]
    pu = px[:, 2 * H:] + jnp.dot(lzs, wus_ref[...], preferred_element_type=f32)
    hc = jnp.tanh(pu.reshape(TB, N, H) + ub_ref[...][None])

    h_ref[...] = (r * sb + (1.0 - r) * hc).astype(h_ref.dtype)


# ------------------------------ wrapper ------------------------------------ #
def agcrn_cell_forward(x, state, node_embed,
                       gate_w_pool, gate_b_pool, upd_w_pool, upd_b_pool,
                       *, cheb_k, tb=None):
    B, N, dim_in = x.shape
    hidden = state.shape[-1]
    embed_dim = node_embed.shape[-1]
    assert cheb_k >= 2, "AGCRN uses [I, softmax-support, ...]; cheb_k >= 2"
    dkx = embed_dim * cheb_k * dim_in          # x-part contraction length
    dks = embed_dim * cheb_k * hidden          # state-part contraction length

    # ---- layout plumbing only: split i -> (x, state), fuse z|r, cast bf16 ---
    w_gx = gate_w_pool[:, :, :dim_in, :].reshape(dkx, 2 * hidden)
    w_gs = gate_w_pool[:, :, dim_in:, :].reshape(dks, 2 * hidden).astype(jnp.bfloat16)
    w_ux = upd_w_pool[:, :, :dim_in, :].reshape(dkx, hidden)
    w_us = upd_w_pool[:, :, dim_in:, :].reshape(dks, hidden).astype(jnp.bfloat16)
    # fuse gate & update x-part weights -> single x-side matmul per block
    w_x_all = jnp.concatenate([w_gx, w_ux], axis=-1).astype(jnp.bfloat16)  # [dkx, 3H]

    vmem = lambda: pl.BlockSpec(memory_space=pltpu.MemorySpace.VMEM)

    # ---- prologue: batch-invariant node_embed-only work (runs once) ---------
    # NOTE: for very large graphs (N in the low thousands) the untiled
    # (K-1, N, N) stack would need tiling; bf16 storage already halves it.
    cheb, gbias, ubias, e_exp_x, e_exp_s = pl.pallas_call(
        _agcrn_prologue_kernel,
        out_shape=(jax.ShapeDtypeStruct((cheb_k - 1, N, N), jnp.bfloat16),
                   jax.ShapeDtypeStruct((N, 2 * hidden), jnp.float32),
                   jax.ShapeDtypeStruct((N, hidden), jnp.float32),
                   jax.ShapeDtypeStruct((N, dkx), jnp.float32),
                   jax.ShapeDtypeStruct((N, dks), jnp.float32)),
        in_specs=[vmem() for _ in range(3)],
        out_specs=tuple(vmem() for _ in range(5)),
    )(node_embed, gate_b_pool, upd_b_pool)

    # ---- batch blocking --------------------------------------------------- #
    # Default TB sized for v7x (64 MiB VMEM); raise toward 16+ on v5e/v6e.
    # When B permits, prefer ceil(B/TB) >= 2 (and even) so both TensorCores
    # get work from dimension_semantics=("parallel",).
    if tb is None:
        tb = max(1, min(B, 8))
    nblk = -(-B // tb)
    b_pad = nblk * tb
    if b_pad != B:
        pad = ((0, b_pad - B), (0, 0), (0, 0))
        x_p, s_p = jnp.pad(x, pad), jnp.pad(state, pad)
    else:
        x_p, s_p = x, state

    # ---- vmem limit from the actual footprint (floor 32 MiB, cap 100 MiB) ---
    nbytes = lambda shape, dt: int(np.prod(shape)) * jnp.dtype(dt).itemsize
    per_step = (nbytes((tb, N, dim_in), jnp.float32)
                + 2 * nbytes((tb, N, hidden), jnp.float32))
    invariant = (nbytes((cheb_k - 1, N, N), jnp.bfloat16)
                 + nbytes((N, dkx), jnp.float32) + nbytes((N, dks), jnp.float32)
                 + nbytes((dkx, 3 * hidden), jnp.bfloat16)
                 + nbytes((dks, 2 * hidden), jnp.bfloat16)
                 + nbytes((dks, hidden), jnp.bfloat16)
                 + nbytes((N, 2 * hidden), jnp.float32)
                 + nbytes((N, hidden), jnp.float32))
    scratch = (nbytes((tb * N, dks), jnp.float32)
               + nbytes((tb * N, dks), jnp.bfloat16)
               + 3 * nbytes((tb, N, cheb_k * hidden), jnp.float32)
               + (cheb_k - 1) * nbytes((tb, N, N), jnp.bfloat16))
    vmem_limit = int(min(100 << 20,
                         max(32 << 20, 2 * (per_step + invariant) + 2 * scratch)))

    const2 = lambda b: (0, 0)
    const3 = lambda b: (0, 0, 0)
    h = pl.pallas_call(
        _agcrn_step_kernel,
        grid=(nblk,),
        out_shape=jax.ShapeDtypeStruct((b_pad, N, hidden), jnp.float32),
        in_specs=[
            pl.BlockSpec((tb, N, dim_in), lambda b: (b, 0, 0)),   # x block
            pl.BlockSpec((tb, N, hidden), lambda b: (b, 0, 0)),   # state block
            pl.BlockSpec((cheb_k - 1, N, N), const3),             # cheb (bf16)
            pl.BlockSpec((N, dkx), const2),                       # E_exp x-part
            pl.BlockSpec((N, dks), const2),                       # E_exp s-part
            pl.BlockSpec((dkx, 3 * hidden), const2),              # W_x (gate|upd)
            pl.BlockSpec((dks, 2 * hidden), const2),              # W_gs (z|r)
            pl.BlockSpec((dks, hidden), const2),                  # W_us
            pl.BlockSpec((N, 2 * hidden), const2),                # gate bias
            pl.BlockSpec((N, hidden), const2),                    # update bias
        ],
        out_specs=pl.BlockSpec((tb, N, hidden), lambda b: (b, 0, 0)),
        compiler_params=pltpu.CompilerParams(
            dimension_semantics=("parallel",),
            vmem_limit_bytes=vmem_limit),
    )(x_p, s_p, cheb, e_exp_x, e_exp_s, w_x_all, w_gs, w_us, gbias, ubias)
    return h[:B] if b_pad != B else h


# --------------------------- pure-JAX references --------------------------- #
def _avwgcn_ref(x, E, w_pool, b_pool, cheb_k, *, mirror_kernel_precision):
    """PyTorch-semantics AVWGCN.  mirror_kernel_precision=True replicates the
    kernel's policy: bf16 operands on support + projection matmuls (identity
    support applied to exact f32 input), f32 accumulation everywhere."""
    f32 = jnp.float32
    N = E.shape[0]
    hi = jax.lax.Precision.HIGHEST
    S = jax.nn.softmax(jax.nn.relu(jnp.dot(E, E.T, precision=hi)), axis=1)
    sset = [jnp.eye(N, dtype=f32), S]
    for _ in range(2, cheb_k):
        sset.append(2.0 * jnp.dot(S, sset[-1], precision=hi) - sset[-2])

    if mirror_kernel_precision:
        x16 = x.astype(jnp.bfloat16).astype(f32)
        parts = [x] + [jnp.einsum('nm,bmi->bni',
                                  Sk.astype(jnp.bfloat16).astype(f32), x16,
                                  precision=hi) for Sk in sset[1:]]
    else:
        parts = [jnp.einsum('nm,bmi->bni', Sk, x, precision=hi) for Sk in sset]
    x_g = jnp.stack(parts, axis=2)                                 # [B, N, K, Ci]
    L = E[None, :, :, None, None] * x_g[:, :, None, :, :]          # [B,N,D,K,Ci]
    W = w_pool
    if mirror_kernel_precision:
        L = L.astype(jnp.bfloat16).astype(f32)
        W = W.astype(jnp.bfloat16).astype(f32)
    out = jnp.einsum('bndki,dkio->bno', L, W, precision=hi)
    return out + jnp.dot(E, b_pool, precision=hi)


def _agcrn_cell_ref(x, state, E, gw, gb, uw, ub, cheb_k, hidden, *, mirror):
    inp = jnp.concatenate([x, state], axis=-1)
    zr = jax.nn.sigmoid(
        _avwgcn_ref(inp, E, gw, gb, cheb_k, mirror_kernel_precision=mirror))
    z, r = zr[..., :hidden], zr[..., hidden:]
    cand = jnp.concatenate([x, z * state], axis=-1)
    hc = jnp.tanh(
        _avwgcn_ref(cand, E, uw, ub, cheb_k, mirror_kernel_precision=mirror))
    return r * state + (1.0 - r) * hc


# --------------------------------- main ------------------------------------ #
if __name__ == "__main__":
    B, N = 2, 16
    dim_in, dim_out = 4, 32
    cheb_k, embed_dim = 3, 8
    ci = dim_in + dim_out

    key = jax.random.PRNGKey(0)
    ks = jax.random.split(key, 7)
    x = jax.random.normal(ks[0], (B, N, dim_in), jnp.float32)
    state = jax.random.normal(ks[1], (B, N, dim_out), jnp.float32)
    node_embed = jax.random.normal(ks[2], (N, embed_dim), jnp.float32)
    gate_w_pool = 0.1 * jax.random.normal(
        ks[3], (embed_dim, cheb_k, ci, 2 * dim_out), jnp.float32)
    gate_b_pool = 0.1 * jax.random.normal(
        ks[4], (embed_dim, 2 * dim_out), jnp.float32)
    upd_w_pool = 0.1 * jax.random.normal(
        ks[5], (embed_dim, cheb_k, ci, dim_out), jnp.float32)
    upd_b_pool = 0.1 * jax.random.normal(
        ks[6], (embed_dim, dim_out), jnp.float32)

    h = agcrn_cell_forward(x, state, node_embed,
                           gate_w_pool, gate_b_pool, upd_w_pool, upd_b_pool,
                           cheb_k=cheb_k)
    h = jax.block_until_ready(h)
    h_np = np.asarray(h)

    # 1) Tight check vs a reference mirroring the kernel's precision contract
    #    (bf16 MXU operands on support + projection matmuls, f32 accumulation).
    h_mirror = _agcrn_cell_ref(x, state, node_embed, gate_w_pool, gate_b_pool,
                               upd_w_pool, upd_b_pool, cheb_k, dim_out,
                               mirror=True)
    np.testing.assert_allclose(h_np, np.asarray(h_mirror), rtol=5e-3, atol=5e-3)

    # 2) Loose sanity check vs the pure-f32 PyTorch-semantics reference; the
    #    tolerance only accounts for the declared bf16 matmul-operand policy.
    h_f32 = _agcrn_cell_ref(x, state, node_embed, gate_w_pool, gate_b_pool,
                            upd_w_pool, upd_b_pool, cheb_k, dim_out,
                            mirror=False)
    np.testing.assert_allclose(h_np, np.asarray(h_f32), rtol=1e-1, atol=1e-1)

    print("KERNEL_OK")
</pallas_src>

<mosaic_0001>
module attributes {stable_mosaic.version = 11 : i64} {
  func.func @_agcrn_prologue_kernel(%arg0: memref<16x8xf32, #tpu.memory_space<vmem>>, %arg1: memref<8x64xf32, #tpu.memory_space<vmem>>, %arg2: memref<8x32xf32, #tpu.memory_space<vmem>>, %arg3: memref<2x16x16xbf16, #tpu.memory_space<vmem>>, %arg4: memref<16x64xf32, #tpu.memory_space<vmem>>, %arg5: memref<16x32xf32, #tpu.memory_space<vmem>>, %arg6: memref<16x96xf32, #tpu.memory_space<vmem>>, %arg7: memref<16x768xf32, #tpu.memory_space<vmem>>) attributes {dimension_semantics = [], scalar_prefetch = 0 : i64, scratch_operands = 0 : i64, tpu.core_type = #tpu.core_type<tc>} {
    %c0 = arith.constant 0 : index
    %c0_0 = arith.constant 0 : index
    %0 = vector.load %arg0[%c0, %c0_0] : memref<16x8xf32, #tpu.memory_space<vmem>>, vector<16x8xf32>
    %cst = arith.constant dense<0.000000e+00> : vector<16x16xf32>
    %1 = tpu.matmul %0, %0, %cst {dimension_numbers = #tpu.dot_dimension_numbers<[1], [1], [0], [0], [0, 0, 1, 0], [], []>} : vector<16x8xf32>, vector<16x8xf32>, vector<16x16xf32> -> vector<16x16xf32>
    %cst_1 = arith.constant 0.000000e+00 : f32
    %2 = vector.broadcast %cst_1 : f32 to vector<16x16xf32>
    %3 = arith.maximumf %1, %2 : vector<16x16xf32>
    %cst_2 = arith.constant dense<0xFF800000> : vector<16xf32>
    %4 = vector.multi_reduction <maximumf>, %3, %cst_2 [1] : vector<16x16xf32> to vector<16xf32>
    %5 = vector.shape_cast %4 : vector<16xf32> to vector<16x1xf32>
    %6 = vector.broadcast %5 : vector<16x1xf32> to vector<16x16xf32>
    %7 = arith.subf %3, %6 : vector<16x16xf32>
    %8 = math.exp %7 : vector<16x16xf32>
    %cst_3 = arith.constant dense<0.000000e+00> : vector<16xf32>
    %9 = vector.multi_reduction <add>, %8, %cst_3 [1] : vector<16x16xf32> to vector<16xf32>
    %10 = vector.shape_cast %9 : vector<16xf32> to vector<16x1xf32>
    %11 = vector.broadcast %10 : vector<16x1xf32> to vector<16x16xf32>
    %12 = arith.divf %8, %11 : vector<16x16xf32>
    %13 = arith.truncf %12 : vector<16x16xf32> to vector<16x16xbf16>
    %c0_4 = arith.constant 0 : index
    %c0_5 = arith.constant 0 : index
    %c0_6 = arith.constant 0 : index
    %14 = vector.load %arg3[%c0_4, %c0_5, %c0_6] : memref<2x16x16xbf16, #tpu.memory_space<vmem>>, vector<1x16x16xbf16>
    %15 = vector.shape_cast %14 : vector<1x16x16xbf16> to vector<16x16xbf16>
    %16 = vector.shape_cast %13 : vector<16x16xbf16> to vector<1x16x16xbf16>
    tpu.vector_store %arg3[%c0_4, %c0_5, %c0_6], %16 {strides = array<i32>} : memref<2x16x16xbf16, #tpu.memory_space<vmem>>, vector<1x16x16xbf16>,
    %17 = tpu.iota {dimensions = array<i32: 0>} : vector<16x16xi32>
    %18 = tpu.iota {dimensions = array<i32: 1>} : vector<16x16xi32>
    %19 = arith.cmpi eq, %17, %18 : vector<16x16xi32>
    %20 = arith.extui %19 : vector<16x16xi1> to vector<16x16xi32>
    %21 = arith.sitofp %20 : vector<16x16xi32> to vector<16x16xf32>
    %cst_7 = arith.constant dense<0.000000e+00> : vector<16x16xf32>
    %22 = tpu.matmul %12, %12, %cst_7 {dimension_numbers = #tpu.dot_dimension_numbers<[1], [0], [0], [1], [0, 0, 1, 1], [], []>} : vector<16x16xf32>, vector<16x16xf32>, vector<16x16xf32> -> vector<16x16xf32>
    %cst_8 = arith.constant 2.000000e+00 : f32
    %23 = vector.broadcast %cst_8 : f32 to vector<16x16xf32>
    %24 = arith.mulf %23, %22 : vector<16x16xf32>
    %25 = arith.subf %24, %21 : vector<16x16xf32>
    %26 = arith.truncf %25 : vector<16x16xf32> to vector<16x16xbf16>
    %c1 = arith.constant 1 : index
    %c0_9 = arith.constant 0 : index
    %c0_10 = arith.constant 0 : index
    %27 = vector.load %arg3[%c1, %c0_9, %c0_10] : memref<2x16x16xbf16, #tpu.memory_space<vmem>>, vector<1x16x16xbf16>
    %28 = vector.shape_cast %27 : vector<1x16x16xbf16> to vector<16x16xbf16>
    %29 = vector.shape_cast %26 : vector<16x16xbf16> to vector<1x16x16xbf16>
    tpu.vector_store %arg3[%c1, %c0_9, %c0_10], %29 {strides = array<i32>} : memref<2x16x16xbf16, #tpu.memory_space<vmem>>, vector<1x16x16xbf16>,
    %c0_11 = arith.constant 0 : index
    %c0_12 = arith.constant 0 : index
    %30 = vector.load %arg1[%c0_11, %c0_12] : memref<8x64xf32, #tpu.memory_space<vmem>>, vector<8x64xf32>
    %cst_13 = arith.constant dense<0.000000e+00> : vector<16x64xf32>
    %31 = tpu.matmul %0, %30, %cst_13 {dimension_numbers = #tpu.dot_dimension_numbers<[1], [0], [0], [1], [0, 0, 1, 1], [], []>} : vector<16x8xf32>, vector<8x64xf32>, vector<16x64xf32> -> vector<16x64xf32>
    %c0_14 = arith.constant 0 : index
    %c0_15 = arith.constant 0 : index
    %32 = vector.load %arg4[%c0_14, %c0_15] : memref<16x64xf32, #tpu.memory_space<vmem>>, vector<16x64xf32>
    tpu.vector_store %arg4[%c0_14, %c0_15], %31 {strides = array<i32>} : memref<16x64xf32, #tpu.memory_space<vmem>>, vector<16x64xf32>,
    %c0_16 = arith.constant 0 : index
    %c0_17 = arith.constant 0 : index
    %33 = vector.load %arg2[%c0_16, %c0_17] : memref<8x32xf32, #tpu.memory_space<vmem>>, vector<8x32xf32>
    %cst_18 = arith.constant dense<0.000000e+00> : vector<16x32xf32>
    %34 = tpu.matmul %0, %33, %cst_18 {dimension_numbers = #tpu.dot_dimension_numbers<[1], [0], [0], [1], [0, 0, 1, 1], [], []>} : vector<16x8xf32>, vector<8x32xf32>, vector<16x32xf32> -> vector<16x32xf32>
    %c0_19 = arith.constant 0 : index
    %c0_20 = arith.constant 0 : index
    %35 = vector.load %arg5[%c0_19, %c0_20] : memref<16x32xf32, #tpu.memory_space<vmem>>, vector<16x32xf32>
    tpu.vector_store %arg5[%c0_19, %c0_20], %34 {strides = array<i32>} : memref<16x32xf32, #tpu.memory_space<vmem>>, vector<16x32xf32>,
    %36 = vector.extract_strided_slice %0 {offsets = [0, 0], sizes = [16, 1], strides = [1, 1]} : vector<16x8xf32> to vector<16x1xf32>
    %37 = vector.shape_cast %36 : vector<16x1xf32> to vector<16x1xf32>
    %38 = vector.broadcast %37 : vector<16x1xf32> to vector<16x12xf32>
    %39 = vector.extract_strided_slice %0 {offsets = [0, 1], sizes = [16, 1], strides = [1, 1]} : vector<16x8xf32> to vector<16x1xf32>
    %40 = vector.shape_cast %39 : vector<16x1xf32> to vector<16x1xf32>
    %41 = vector.broadcast %40 : vector<16x1xf32> to vector<16x12xf32>
    %42 = vector.extract_strided_slice %0 {offsets = [0, 2], sizes = [16, 1], strides = [1, 1]} : vector<16x8xf32> to vector<16x1xf32>
    %43 = vector.shape_cast %42 : vector<16x1xf32> to vector<16x1xf32>
    %44 = vector.broadcast %43 : vector<16x1xf32> to vector<16x12xf32>
    %45 = vector.extract_strided_slice %0 {offsets = [0, 3], sizes = [16, 1], strides = [1, 1]} : vector<16x8xf32> to vector<16x1xf32>
    %46 = vector.shape_cast %45 : vector<16x1xf32> to vector<16x1xf32>
    %47 = vector.broadcast %46 : vector<16x1xf32> to vector<16x12xf32>
    %48 = vector.extract_strided_slice %0 {offsets = [0, 4], sizes = [16, 1], strides = [1, 1]} : vector<16x8xf32> to vector<16x1xf32>
    %49 = vector.shape_cast %48 : vector<16x1xf32> to vector<16x1xf32>
    %50 = vector.broadcast %49 : vector<16x1xf32> to vector<16x12xf32>
    %51 = vector.extract_strided_slice %0 {offsets = [0, 5], sizes = [16, 1], strides = [1, 1]} : vector<16x8xf32> to vector<16x1xf32>
    %52 = vector.shape_cast %51 : vector<16x1xf32> to vector<16x1xf32>
    %53 = vector.broadcast %52 : vector<16x1xf32> to vector<16x12xf32>
    %54 = vector.extract_strided_slice %0 {offsets = [0, 6], sizes = [16, 1], strides = [1, 1]} : vector<16x8xf32> to vector<16x1xf32>
    %55 = vector.shape_cast %54 : vector<16x1xf32> to vector<16x1xf32>
    %56 = vector.broadcast %55 : vector<16x1xf32> to vector<16x12xf32>
    %57 = vector.extract_strided_slice %0 {offsets = [0, 7], sizes = [16, 1], strides = [1, 1]} : vector<16x8xf32> to vector<16x1xf32>
    %58 = vector.shape_cast %57 : vector<16x1xf32> to vector<16x1xf32>
    %59 = vector.broadcast %58 : vector<16x1xf32> to vector<16x12xf32>
    %60 = tpu.concatenate %38, %41, %44, %47, %50, %53, %56, %59 in 1 : vector<16x12xf32>, vector<16x12xf32>, vector<16x12xf32>, vector<16x12xf32>, vector<16x12xf32>, vector<16x12xf32>, vector<16x12xf32>, vector<16x12xf32> -> vector<16x96xf32>
    %c0_21 = arith.constant 0 : index
    %c0_22 = arith.constant 0 : index
    %61 = vector.load %arg6[%c0_21, %c0_22] : memref<16x96xf32, #tpu.memory_space<vmem>>, vector<16x96xf32>
    tpu.vector_store %arg6[%c0_21, %c0_22], %60 {strides = array<i32>} : memref<16x96xf32, #tpu.memory_space<vmem>>, vector<16x96xf32>,
    %62 = vector.extract_strided_slice %0 {offsets = [0, 0], sizes = [16, 1], strides = [1, 1]} : vector<16x8xf32> to vector<16x1xf32>
    %63 = vector.shape_cast %62 : vector<16x1xf32> to vector<16x1xf32>
    %64 = vector.broadcast %63 : vector<16x1xf32> to vector<16x96xf32>
    %65 = vector.extract_strided_slice %0 {offsets = [0, 1], sizes = [16, 1], strides = [1, 1]} : vector<16x8xf32> to vector<16x1xf32>
    %66 = vector.shape_cast %65 : vector<16x1xf32> to vector<16x1xf32>
    %67 = vector.broadcast %66 : vector<16x1xf32> to vector<16x96xf32>
    %68 = vector.extract_strided_slice %0 {offsets = [0, 2], sizes = [16, 1], strides = [1, 1]} : vector<16x8xf32> to vector<16x1xf32>
    %69 = vector.shape_cast %68 : vector<16x1xf32> to vector<16x1xf32>
    %70 = vector.broadcast %69 : vector<16x1xf32> to vector<16x96xf32>
    %71 = vector.extract_strided_slice %0 {offsets = [0, 3], sizes = [16, 1], strides = [1, 1]} : vector<16x8xf32> to vector<16x1xf32>
    %72 = vector.shape_cast %71 : vector<16x1xf32> to vector<16x1xf32>
    %73 = vector.broadcast %72 : vector<16x1xf32> to vector<16x96xf32>
    %74 = vector.extract_strided_slice %0 {offsets = [0, 4], sizes = [16, 1], strides = [1, 1]} : vector<16x8xf32> to vector<16x1xf32>
    %75 = vector.shape_cast %74 : vector<16x1xf32> to vector<16x1xf32>
    %76 = vector.broadcast %75 : vector<16x1xf32> to vector<16x96xf32>
    %77 = vector.extract_strided_slice %0 {offsets = [0, 5], sizes = [16, 1], strides = [1, 1]} : vector<16x8xf32> to vector<16x1xf32>
    %78 = vector.shape_cast %77 : vector<16x1xf32> to vector<16x1xf32>
    %79 = vector.broadcast %78 : vector<16x1xf32> to vector<16x96xf32>
    %80 = vector.extract_strided_slice %0 {offsets = [0, 6], sizes = [16, 1], strides = [1, 1]} : vector<16x8xf32> to vector<16x1xf32>
    %81 = vector.shape_cast %80 : vector<16x1xf32> to vector<16x1xf32>
    %82 = vector.broadcast %81 : vector<16x1xf32> to vector<16x96xf32>
    %83 = vector.extract_strided_slice %0 {offsets = [0, 7], sizes = [16, 1], strides = [1, 1]} : vector<16x8xf32> to vector<16x1xf32>
    %84 = vector.shape_cast %83 : vector<16x1xf32> to vector<16x1xf32>
    %85 = vector.broadcast %84 : vector<16x1xf32> to vector<16x96xf32>
    %86 = tpu.concatenate %64, %67, %70, %73, %76, %79, %82, %85 in 1 : vector<16x96xf32>, vector<16x96xf32>, vector<16x96xf32>, vector<16x96xf32>, vector<16x96xf32>, vector<16x96xf32>, vector<16x96xf32>, vector<16x96xf32> -> vector<16x768xf32>
    %c0_23 = arith.constant 0 : index
    %c0_24 = arith.constant 0 : index
    %87 = vector.load %arg7[%c0_23, %c0_24] : memref<16x768xf32, #tpu.memory_space<vmem>>, vector<16x768xf32>
    tpu.vector_store %arg7[%c0_23, %c0_24], %86 {strides = array<i32>} : memref<16x768xf32, #tpu.memory_space<vmem>>, vector<16x768xf32>,
    return
  }
}

</mosaic_0001>

<bundles_post_ra>
// kernel: tpu_custom_call.1
= control target key start
LH: loop header
LB: loop body
LE: loop exit
PB: predicated region body
PF: predicated region fallthrough
CT: control target
= control target key end

     0   :  { %13 = vsyncpa [#allocation3], 0  ;;  %s756_s0 = inlined_call_operand.vmem [shape: f32[16,8], index: 0, kind: input, shape index: {}]   ;;  %s757_s1 = inlined_call_operand.vmem [shape: f32[8,64], index: 1, kind: input, shape index: {}]   ;;  %s758_s2 = inlined_call_operand.vmem [shape: f32[8,32], index: 2, kind: input, shape index: {}]   ;;  %s759_s3 = inlined_call_operand.hbm [shape: bf16[2,16,16], index: 3, kind: output, shape index: {0}]   ;;  %s760_s4 = inlined_call_operand.hbm [shape: f32[16,64], index: 4, kind: output, shape index: {1}]   ;;  %s761_s5 = inlined_call_operand.hbm [shape: f32[16,32], index: 5, kind: output, shape index: {2}]   ;;  %s762_s6 = inlined_call_operand.hbm [shape: f32[16,96], index: 6, kind: output, shape index: {3}]   ;;  %s763_s7 = inlined_call_operand.hbm [shape: f32[16,768], index: 7, kind: output, shape index: {4}]  }
   0x1   :  { %14 = vsyncpa [#allocation5], 0  ;;  %v656_v0 = vld [vmem:[%s756_s0 + $0x8] sm:$0xff]  ;;  %vm24_vm0 = vcmask 64512  }
   0x2   :  { %15 = vsyncpa [#allocation8], 0  ;;  %413 = vmatpush.xpose.msk.msra.mxu0 %vm24_vm0, %v656_v0  ;;  %v663_v1 = vld [vmem:[%s756_s0] sm:$0xff]  ;;  %vm56_vm1 = vcmask 130048   ;;  %v593_v8 = vmov 0   ;;  %v594_v9 = vmov 1  }
   0x3   :  { %445 = vset.pattern.permute.xlu2 %v593_v8  ;;  %447 = vset.pattern.permute.xlu1 %v594_v9  ;;  %v595_v18 = vmov 2   ;;  %v596_v21 = vmov 5   ;;  %v597_v22 = vmov 3   ;;  %v598_v23 = vmov 7   ;;  %v159_v26 = vld [vmem:[%s757_s1] sm:$0xff]  ;;  %s601_s1 = smov [#allocation7]  }
   0x4   :  { %214 = vperm.xlu2 %445, %v663_v1   ;;  %446 = vset.pattern.permute.xlu0 %v594_v9  ;;  %v599_v24 = vmov 4   ;;  %v600_v25 = vmov 6   ;;  %v186_v27 = vld [vmem:[%s758_s2] sm:$0xff]  ;;  %vm183_vm6 = vcmask 523264   ;;  %vm298_vm7 = vcmask 785408   ;;  %s368_s2 = sshll.u32 %s601_s1, 4  ;;  %s369_s2 = int_to_ptr.vmem [resolvable:$true] %s368_s2 }
   0x5   :  { %175 = vmatpush.msra.mxu2 %v159_v26  ;;  %202 = vmatpush.msra.mxu3 %v186_v27  ;;  %vm107_vm8 = vcmask 125952   ;;  %vm210_vm13 = vcmask 261120   ;;  %vm277_vm14 = vcmask 97280   ;;  %vm280_vm15 = vcmask 195584   ;;  %s370_s10 = sshll.u32 %s762_s6, 4  ;;  %s602_s11 = smov [#allocation9]   ;;  %s371_s10 = int_to_ptr.hbm [resolvable:$true] %s370_s10 }
   0x6   :  { %414 = vmatpush.xpose.msk.msra.mxu0 %vm24_vm0, %v663_v1  ;;  %421 = vmatmul.msk.f32.vlgmr.msra.gmra.mxu2 %vm24_vm0, %v663_v1  ;;  %s381_s12 = sshll.u32 %s602_s11, 4  ;;  %s383_s15 = sshll.u32 %s763_s7, 4  ;;  %s382_s12 = int_to_ptr.vmem [resolvable:$true] %s381_s12  ;;  %s384_s15 = int_to_ptr.hbm [resolvable:$true] %s383_s15 }
   0x7   :  { %423 = vmatmul.msk.f32.vlgmr.msra.gmra.mxu3 %vm24_vm0, %v663_v1  ;;  %s603_s6 = smov 128   ;;  %s604_s16 = smov 8  }
   0x8   :  { %s605_s7 = smov 768   ;;  %s606_s17 = smov 48  }
   0x9   :  { %415 = vmatmul.msk.f32.vlgmr.msra.gmra.mxu0 %vm24_vm0, %v663_v1  ;;  %s607_s18 = smov [#allocation4]   ;;  %s344_s22 = sshll.u32 %s760_s4, 4  ;;  %s345_s22 = int_to_ptr.hbm [resolvable:$true] %s344_s22 }
   0xa   :  { %s342_s19 = sshll.u32 %s607_s18, 4  ;;  %s608_s23 = smov [#allocation6]   ;;  %s343_s19 = int_to_ptr.vmem [resolvable:$true] %s342_s19 }
   0xb   :  { %s355_s24 = sshll.u32 %s608_s23, 4  ;;  %s357_s27 = sshll.u32 %s761_s5, 4  ;;  %s356_s24 = int_to_ptr.vmem [resolvable:$true] %s355_s24  ;;  %s358_s27 = int_to_ptr.hbm [resolvable:$true] %s357_s27 }
   0xc   :  { %218 = vperm.xlu2 %445, %v656_v0   ;;  %s610_s4 = smov [#allocation2]   ;;  %s331_s29 = sshll.u32 %s759_s3, 4  ;;  %s332_s29 = int_to_ptr.hbm [resolvable:$true] %s331_s29 }
   0xd   :  { %s329_s5 = sshll.u32 %s610_s4, 4  ;;  %s611_s30 = smov 64   ;;  %s330_s5 = int_to_ptr.vmem [resolvable:$true] %s329_s5 }
   0xe   :  { %422 = vmatmul.msk.f32.gmra.mxu2 %vm24_vm0, %v656_v0  ;;  %s612_s1 = smov 4  }
   0xf   :  { %424 = vmatmul.msk.f32.gmra.mxu3 %vm24_vm0, %v656_v0 }
  0x11   :  { %416 = vmatmul.msk.f32.gmra.mxu0 %vm24_vm0, %v656_v0  ;;  %vm283_vm0 = vcmask 293888  }
  0x14   :  { %448 = vset.pattern.permute.xlu2 %v595_v18 }
  0x15   :  { %230 = vperm.xlu2 %448, %v663_v1  }
  0x1d   :  { %234 = vperm.xlu2 %448, %v656_v0  }
  0x25   :  { %449 = vset.pattern.permute.xlu2 %v597_v22 }
  0x26   :  { %238 = vperm.xlu2 %449, %v663_v1  }
  0x2e   :  { %242 = vperm.xlu2 %449, %v656_v0  }
  0x36   :  { %451 = vset.pattern.permute.xlu2 %v599_v24 }
  0x37   :  { %250 = vperm.xlu2 %451, %v656_v0  }
  0x3f   :  { %454 = vset.pattern.permute.xlu2 %v600_v25 }
  0x40   :  { %262 = vperm.xlu2 %454, %v663_v1  }
  0x48   :  { %456 = vset.pattern.permute.xlu2 %v598_v23 }
  0x49   :  { %270 = vperm.xlu2 %456, %v663_v1  }
  0x5e   :  { %v711_v29 = vpop.permute.xlu2 %214 }
  0x66   :  { %v219_v37 = vpop.permute.xlu2 %218 }
  0x6f   :  { %v231_v50 = vpop.permute.xlu2 %230 }
  0x77   :  { %v235_v60 = vpop.permute.xlu2 %234 }
  0x86   :  { %v48_v2 = vpop.f32.mrf.mxu0 }
  0x87   :  { %v54_v6 = vmax.f32 %v48_v2, 0.0 }
  0x89   :  { %v57_v7 = vsel %vm56_vm1, %v54_v6, -inf }
  0x8e   :  { %v51_v3 = vpop.f32.mrf.mxu0 }
  0x8f   :  { %v55_v4 = vmax.f32 %v51_v3, 0.0 }
  0x91   :  { %v60_v5 = vsel %vm56_vm1, %v55_v4, -inf }
  0x92   :  { %61 = vmax.xlane.f32.xlu0 %v60_v5 }
  0x9a   :  { %58 = vmax.xlane.f32.xlu0 %v57_v7 }
  0xae   :  { %222 = vperm.xlu0 %446, %v663_v1  }
  0xb6   :  { %453 = vset.pattern.permute.xlu0 %v596_v21 }
  0xb7   :  { %258 = vperm.xlu0 %453, %v656_v0  }
  0xbf   :  { %458 = vset.pattern.permute.xlu0 %v598_v23 }
 0x105   :  { %v62_v10 = vpop.xlane.xlu0 %61 }
 0x106   :  { %v64_v11 = vsub.f32 %v55_v4, %v62_v10 }
 0x108   :  { %v67_v12 = vmul.f32 1.442695, %v64_v11 }
 0x10a   :  { %459 = vpow2.f32 %v67_v12 }
 0x10d   :  { %v59_v13 = vpop.xlane.xlu0 %58 }
 0x10e   :  { %v63_v14 = vsub.f32 %v54_v6, %v59_v13 }
 0x110   :  { %v676_v15 = vpop.eup %459  ;;  %v65_v16 = vmul.f32 1.442695, %v63_v14 }
 0x111   :  { %v72_v17 = vsel %vm56_vm1, %v676_v15, 0.0 }
 0x112   :  { %461 = vpow2.f32 %v65_v16  ;;  %73 = vadd.xlane.f32.xlu1 %v72_v17 }
 0x118   :  { %v681_v19 = vpop.eup %461 }
 0x119   :  { %v69_v20 = vsel %vm56_vm1, %v681_v19, 0.0 }
 0x11a   :  { %70 = vadd.xlane.f32.xlu1 %v69_v20 }
 0x120   :  { %v223_v52 = vpop.permute.xlu0 %222 }
 0x121   :  { %v301_v54 = vsel %vm298_vm7, %v711_v29, %v223_v52  ;;  %v303_v55 = vsel %vm183_vm6, %v223_v52, %v231_v50  ;;  %v278_v8 = vsel %vm277_vm14, %v711_v29, %v223_v52 }
 0x122   :  { %313 = vst [vmem:[#allocation9] sm:$0xff] %v301_v54  ;;  %v281_v13 = vsel %vm280_vm15, %v278_v8, %v231_v50 }
 0x123   :  { %314 = vst [vmem:[#allocation9 + $0x8] sm:$0xff] %v303_v55 }
 0x129   :  { %v259_v10 = vpop.permute.xlu0 %258 }
 0x133   :  { %226 = vperm.xlu1 %447, %v656_v0  }
 0x13b   :  { %450 = vset.pattern.permute.xlu1 %v599_v24 }
 0x13c   :  { %246 = vperm.xlu1 %450, %v663_v1  }
 0x144   :  { %452 = vset.pattern.permute.xlu1 %v596_v21 }
 0x145   :  { %254 = vperm.xlu1 %452, %v663_v1  }
 0x14d   :  { %455 = vset.pattern.permute.xlu1 %v600_v25 }
 0x14e   :  { %266 = vperm.xlu1 %455, %v656_v0  }
 0x156   :  { %457 = vset.pattern.permute.xlu1 %v598_v23 }
 0x157   :  { %274 = vperm.xlu1 %457, %v656_v0   ;;  %v239_v0 = vpop.permute.xlu2 %238 }
 0x158   :  { %v305_v1 = vsel %vm210_vm13, %v231_v50, %v239_v0 }
 0x159   :  { %315 = vst [vmem:[#allocation9 + $0x10] sm:$0xff] %v305_v1 }
 0x15f   :  { %v243_v3 = vpop.permute.xlu2 %242 }
 0x160   :  { %v306_v4 = vsel %vm210_vm13, %v235_v60, %v243_v3 }
 0x161   :  { %321 = vst [vmem:[#allocation9 + $0x40] sm:$0xff] %v306_v4 }
 0x167   :  { %v251_v9 = vpop.permute.xlu2 %250 }
 0x168   :  { %v308_v12 = vsel %vm298_vm7, %v251_v9, %v259_v10 }
 0x169   :  { %322 = vst [vmem:[#allocation9 + $0x48] sm:$0xff] %v308_v12 }
 0x185   :  { %v74_v28 = vpop.xlane.xlu1 %73 }
 0x186   :  { %463 = vrcp.f32 %v74_v28  ;;  %v101_v34 = vand.u32 2147483648, %v74_v28  ;;  %v99_v36 = vand.u32 2147483647, %v74_v28  ;;  %vm95_vm3 = vweird.f32 %v74_v28 }
 0x188   :  { %v102_v40 = vor.u32 1.1754944e-38, %v101_v34  ;;  %vm100_vm5 = vcmp.eq.f32.partialorder %v99_v36, 8.507059e+37  ;;  %v110_v36 = vlaneseq }
 0x18c   :  { %v464_v30 = vpop.eup %463 }
 0x18d   :  { %v91_v31 = vmul.f32 %v464_v30, %v74_v28  ;;  %v71_v32 = vpop.xlane.xlu1 %70  ;;  %vm96_vm2 = vweird.f32 %v464_v30 }
 0x18e   :  { %465 = vrcp.f32 %v71_v32  ;;  %vm97_vm4 = vmor %vm95_vm3, %vm96_vm2  ;;  %v86_v46 = vand.u32 2147483648, %v71_v32  ;;  %v84_v49 = vand.u32 2147483647, %v71_v32  ;;  %vm80_vm10 = vweird.f32 %v71_v32 }
 0x18f   :  { %v92_v33 = vsub.f32 1.0, %v91_v31  ;;  %vm289_vm2 = vcmask 490496   ;;  %vm292_vm3 = vcmask 588800  }
 0x190   :  { %v87_v53 = vor.u32 1.1754944e-38, %v86_v46  ;;  %vm85_vm12 = vcmp.eq.f32.partialorder %v84_v49, 8.507059e+37 }
 0x191   :  { %v93_v35 = vmul.f32 %v464_v30, %v92_v33  ;;  %v204_v33 = vpop.f32.mrf.mxu3 }
 0x192   :  { %211 = vst.msk [vmem:[#allocation6] sm:$0xff] %vm210_vm13, %v204_v33 }
 0x193   :  { %v94_v38 = vadd.f32 %v464_v30, %v93_v35 }
 0x194   :  { %v466_v39 = vpop.eup %465 }
 0x195   :  { %v76_v41 = vmul.f32 %v466_v39, %v71_v32  ;;  %v98_v42 = vsel %vm97_vm4, %v464_v30, %v94_v38  ;;  %vm81_vm9 = vweird.f32 %v466_v39  ;;  %vm295_vm4 = vcmask 687104   ;;  %v177_v32 = vpop.f32.mrf.mxu2 }
 0x196   :  { %v103_v43 = vsel %vm100_vm5, %v102_v40, %v98_v42  ;;  %vm82_vm11 = vmor %vm80_vm10, %vm81_vm9  ;;  %184 = vst.msk [vmem:[#allocation4] sm:$0xff] %vm183_vm6, %v177_v32  ;;  %v114_v38 = vand.u32 127, %v110_v36 }
 0x197   :  { %v77_v44 = vsub.f32 1.0, %v76_v41  ;;  %v104_v45 = vmul.f32 %v676_v15, %v103_v43  ;;  %v284_v15 = vsel %vm283_vm0, %v281_v13, %v239_v0 }
 0x199   :  { %v78_v47 = vmul.f32 %v466_v39, %v77_v44  ;;  %v106_v48 = vpack.c.bf16 %v104_v45, %v104_v45  ;;  %141 = vmatpush.msra.mxu1 %v104_v45  ;;  %v207_v35 = vpop.f32.mrf.mxu3 }
 0x19a   :  { %212 = vst.msk [vmem:[#allocation6 + $0x8] sm:$0xff] %vm210_vm13, %v207_v35 }
 0x19b   :  { %v79_v51 = vadd.f32 %v466_v39, %v78_v47  ;;  %109 = vst.msk [vmem:[#allocation2 + $0x4] sm:$0xf] %vm107_vm8, %v106_v48 }
 0x19d   :  { %v83_v56 = vsel %vm82_vm11, %v466_v39, %v79_v51  ;;  %v180_v34 = vpop.f32.mrf.mxu2  ;;  %v609_v39 = vmov 0.0  }
 0x19e   :  { %v88_v57 = vsel %vm85_vm12, %v87_v53, %v83_v56  ;;  %185 = vst.msk [vmem:[#allocation4 + $0x8] sm:$0xff] %vm183_vm6, %v180_v34 }
 0x19f   :  { %v89_v58 = vmul.f32 %v681_v19, %v88_v57  ;;  %v263_v19 = vpop.permute.xlu2 %262  ;;  %350 = dma.vmem_to_hbm [thread:$0]  %s343_s19, 256, %s345_s22, [#allocation5], %s603_s6, %s603_s6, %s604_s16  }
 0x1a0   :  { %363 = dma.vmem_to_hbm [thread:$0]  %s356_s24, 256, %s358_s27, [#allocation5], %s603_s6, %s603_s6, %s604_s16  }
 0x1a1   :  { %v105_v59 = vpack.c.bf16 %v89_v58, %v89_v58  ;;  %142 = vmatpush.msra.mxu1 %v89_v58 }
 0x1a2   :  { %419 = vmatmul.msk.f32.vlgmr.msra.gmra.mxu1 %vm56_vm1, %v89_v58 }
 0x1a3   :  { %108 = vst.msk [vmem:[#allocation2] sm:$0xf] %vm107_vm8, %v105_v59 }
 0x1a5   :  { %v227_v61 = vpop.permute.xlu1 %226 }
 0x1a6   :  { %v302_v62 = vsel %vm298_vm7, %v219_v37, %v227_v61  ;;  %v304_v63 = vsel %vm183_vm6, %v227_v61, %v235_v60  ;;  %v279_v6 = vsel %vm277_vm14, %v219_v37, %v227_v61  ;;  %v111_v37 = vshrl.u32 %v110_v36, 7 }
 0x1a7   :  { %319 = vst [vmem:[#allocation9 + $0x30] sm:$0xff] %v302_v62  ;;  %v282_v11 = vsel %vm280_vm15, %v279_v6, %v235_v60  ;;  %v271_v27 = vpop.permute.xlu2 %270 }
 0x1a8   :  { %320 = vst [vmem:[#allocation9 + $0x38] sm:$0xff] %v304_v63  ;;  %v285_v14 = vsel %vm283_vm0, %v282_v11, %v243_v3  ;;  %v311_v30 = vsel %vm210_vm13, %v263_v19, %v271_v27  ;;  %vm115_vm5 = vcmp.eq.s32.totalorder %v111_v37, %v114_v38  ;;  %v112_v43 = vadd.s32 8, %v111_v37 }
 0x1a9   :  { %318 = vst [vmem:[#allocation9 + $0x28] sm:$0xff] %v311_v30  ;;  %v417_v40 = vsel %vm115_vm5, 1.0, %v609_v39 }
 0x1aa   :  { %420 = vmatmul.msk.f32.gmra.mxu1 %vm56_vm1, %v104_v45  ;;  %vm286_vm1 = vcmask 392192  }
 0x1ab   :  { %v288_v17 = vsel %vm286_vm1, %v285_v14, %v251_v9 }
 0x1ac   :  { %v291_v22 = vsel %vm289_vm2, %v288_v17, %v259_v10 }
 0x1ae   :  { %v247_v2 = vpop.permute.xlu1 %246 }
 0x1af   :  { %v287_v20 = vsel %vm286_vm1, %v284_v15, %v247_v2 }
 0x1b7   :  { %v255_v5 = vpop.permute.xlu1 %254 }
 0x1b8   :  { %v307_v7 = vsel %vm298_vm7, %v247_v2, %v255_v5  ;;  %v309_v21 = vsel %vm183_vm6, %v255_v5, %v263_v19  ;;  %v290_v23 = vsel %vm289_vm2, %v287_v20, %v255_v5 }
 0x1b9   :  { %316 = vst [vmem:[#allocation9 + $0x18] sm:$0xff] %v307_v7  ;;  %v293_v25 = vsel %vm292_vm3, %v290_v23, %v263_v19 }
 0x1ba   :  { %317 = vst [vmem:[#allocation9 + $0x20] sm:$0xff] %v309_v21  ;;  %v296_v29 = vsel %vm295_vm4, %v293_v25, %v271_v27 }
 0x1bb   :  { %299 = vst.msk [vmem:[#allocation7] sm:$0xff] %vm298_vm7, %v296_v29 }
 0x1c0   :  { %v267_v16 = vpop.permute.xlu1 %266 }
 0x1c1   :  { %v310_v18 = vsel %vm183_vm6, %v259_v10, %v267_v16  ;;  %v294_v24 = vsel %vm292_vm3, %v291_v22, %v267_v16 }
 0x1c2   :  { %323 = vst [vmem:[#allocation9 + $0x50] sm:$0xff] %v310_v18 }
 0x1c9   :  { %v275_v26 = vpop.permute.xlu1 %274 }
 0x1ca   :  { %v297_v28 = vsel %vm295_vm4, %v294_v24, %v275_v26  ;;  %v312_v31 = vsel %vm210_vm13, %v267_v16, %v275_v26 }
 0x1cb   :  { %300 = vst.msk [vmem:[#allocation7 + $0x8] sm:$0xff] %vm298_vm7, %v297_v28  ;;  %vm116_vm7 = vcmp.eq.s32.totalorder %v112_v43, %v114_v38 }
 0x1cc   :  { %376 = dma.vmem_to_hbm [thread:$0]  %s369_s2, 256, %s371_s10, [#allocation8], %s603_s6, %s603_s6, %s604_s16   ;;  %324 = vst [vmem:[#allocation9 + $0x58] sm:$0xff] %v312_v31  ;;  %v418_v46 = vsel %vm116_vm7, 1.0, %v609_v39 }
 0x1cd   :  { %389 = dma.vmem_to_hbm [thread:$0]  %s382_s12, 1536, %s384_s15, [#allocation8], %s605_s7, %s605_s7, %s606_s17  }
 0x21f   :  { %v144_v41 = vpop.f32.mrf.mxu1 }
 0x220   :  { %v150_v42 = vmul.f32 2.0, %v144_v41 }
 0x222   :  { %v152_v44 = vsub.f32 %v150_v42, %v417_v40 }
 0x224   :  { %v154_v45 = vpack.c.bf16 %v152_v44, %v152_v44 }
 0x226   :  { %157 = vst.msk [vmem:[#allocation2 + $0x8] sm:$0xf] %vm107_vm8, %v154_v45 }
 0x227   :  { %v147_v47 = vpop.f32.mrf.mxu1 }
 0x228   :  { %v151_v48 = vmul.f32 2.0, %v147_v47 }
 0x22a   :  { %v153_v49 = vsub.f32 %v151_v48, %v418_v46 }
 0x22c   :  { %v155_v50 = vpack.c.bf16 %v153_v49, %v153_v49 }
 0x22e   :  { %158 = vst.msk [vmem:[#allocation2 + $0xc] sm:$0xf] %vm107_vm8, %v155_v50 }
 0x22f   :  { %337 = dma.vmem_to_hbm [thread:$0]  %s330_s5, 256, %s332_s29, [#allocation3], %s611_s30, %s611_s30, %s612_s1  }
 0x230   :  { %587 = dma.done.wait [#allocation3], 256  }
 0x231   :  { %588 = vsyncadd [#allocation3], 4294967040 }
 0x232   :  { %589 = dma.done.wait [#allocation5], 512  }
 0x233   :  { %590 = vsyncadd [#allocation5], 4294966784 }
 0x234   :  { %591 = dma.done.wait [#allocation8], 1792  }
 0x235   :  { %592 = vsyncadd [#allocation8], 4294965504 }
 0x236   :  { %410 = vsyncpa [#allocation3], 1 }
 0x237   :  { %411 = vsyncpa [#allocation5], 1 }
 0x238   :  { %412 = vsyncpa [#allocation8], 1 }

</bundles_post_ra>
